<compile_context>
chip_gen: v7x
topology: tpu7x:2x2x1
jax: 0.10.0
libtpu: 0.0.40
codegen_flags: <defaults>
</compile_context>

<pallas_src>
import functools
import math

import jax
import jax.numpy as jnp
from jax import lax
from jax.experimental import pallas as pl
from jax.experimental.pallas import tpu as pltpu


def _bottleneck_kernel(L, x_ref, w1_ref, w2_ref, w3_ref,
                       s1_ref, b1_ref, s2_ref, b2_ref, s3_ref, b3_ref, o_ref):
    # x_ref: (TM, Cin)   w1: (Cin, W)   w2: (3W, W) flattened block-diag
    # w3: (W, Cout)      s*/b*: (1, C) folded BN scale/bias (f32)
    cdt = x_ref.dtype
    x = x_ref[...]                                                      # (TM, Cin)
    TM = x.shape[0]

    # ---- conv1 (1x1) + BN1 + ReLU (f32 accumulation) ----------------------
    h1 = jnp.dot(x, w1_ref[...], preferred_element_type=jnp.float32)    # (TM, W)
    h1 = jnp.maximum(h1 * s1_ref[...] + b1_ref[...], 0.0)

    # ---- conv2 (k=3, pad=1, grouped) as ONE (TM,3W)@(3W,W) matmul ----------
    # prev[t] = h1[t-1], next[t] = h1[t+1]; zero at per-batch boundaries.
    # Row tiles always hold whole batches, so boundaries are t % L == 0 / L-1.
    pos = lax.broadcasted_iota(jnp.int32, (TM, 1), 0) % L
    prev = jnp.where(pos == 0, 0.0, jnp.roll(h1, 1, axis=0))
    nxt = jnp.where(pos == L - 1, 0.0, jnp.roll(h1, -1, axis=0))
    taps = jnp.concatenate([prev, h1, nxt], axis=1).astype(cdt)          # (TM, 3W)
    h2 = jnp.dot(taps, w2_ref[...], preferred_element_type=jnp.float32)  # (TM, W)
    h2 = jnp.maximum(h2 * s2_ref[...] + b2_ref[...], 0.0)

    # ---- conv3 (1x1) + BN3 + residual + ReLU -------------------------------
    h3 = jnp.dot(h2.astype(cdt), w3_ref[...],
                 preferred_element_type=jnp.float32)                     # (TM, Cout)
    out = h3 * s3_ref[...] + b3_ref[...] + x.astype(jnp.float32)
    o_ref[...] = jnp.maximum(out, 0.0).astype(o_ref.dtype)


def resnext_bottleneck1d(x_blc, w1, w2_flat, w3, s1, b1, s2, b2, s3, b3,
                         *, max_rows=512):
    """x_blc: (B, L, Cin) channels-last.  Returns (B, L, Cout).

    max_rows bounds the per-grid-step row tile (keep <=512 so a v7x-sized VMEM
    budget still double-buffers comfortably; the grid axis stays "parallel" so
    v7x's two TensorCores both get work when there are multiple tiles).
    """
    B, L, Cin = x_blc.shape
    W = w1.shape[1]
    Cout = w3.shape[1]
    assert Cin == Cout, "residual path assumes downsample=None (Cin == Cout)"

    M = B * L
    x2d = x_blc.reshape(M, Cin)

    # Row tile: largest multiple of L that divides M and is <= max_rows, so every
    # tile holds whole batches and the k=3 halo never crosses a tile boundary.
    nb = M // L
    bpb = 1
    for k in range(1, nb + 1):
        if nb % k == 0 and k * L <= max(max_rows, L):
            bpb = k
    TM = bpb * L
    if TM % 8 != 0 and TM != M:       # keep the (8,128) tiling constraint happy
        TM = M
    grid = (M // TM,)

    kernel = functools.partial(_bottleneck_kernel, L)
    full = lambda a: pl.BlockSpec(a.shape, lambda i: (0,) * a.ndim)

    out2d = pl.pallas_call(
        kernel,
        out_shape=jax.ShapeDtypeStruct((M, Cout), x_blc.dtype),
        grid_spec=pltpu.PrefetchScalarGridSpec(
            num_scalar_prefetch=0,
            grid=grid,
            in_specs=[
                pl.BlockSpec((TM, Cin), lambda i: (i, 0)),
                full(w1), full(w2_flat), full(w3),
                full(s1), full(b1), full(s2), full(b2), full(s3), full(b3),
            ],
            out_specs=pl.BlockSpec((TM, Cout), lambda i: (i, 0)),
        ),
        compiler_params=pltpu.CompilerParams(dimension_semantics=("parallel",)),
    )(x2d, w1, w2_flat, w3, s1, b1, s2, b2, s3, b3)
    return out2d.reshape(B, L, Cout)


# ---------------------------------------------------------------------------
# pure-JAX reference (independent path through lax.conv) for verification
# ---------------------------------------------------------------------------
def reference_forward(x_ncl, W1, W2g, W3, bn1, bn2, bn3, groups, eps=1e-5):
    dn = ("NCH", "OIH", "NCH")

    def bn(h, p):
        gamma, beta, mean, var = p
        s = gamma / jnp.sqrt(var + eps)
        return h * s[None, :, None] + (beta - mean * s)[None, :, None]

    h = lax.conv_general_dilated(x_ncl, W1, (1,), "VALID", dimension_numbers=dn)
    h = jax.nn.relu(bn(h, bn1))
    h = lax.conv_general_dilated(h, W2g, (1,), [(1, 1)], dimension_numbers=dn,
                                 feature_group_count=groups)
    h = jax.nn.relu(bn(h, bn2))
    h = lax.conv_general_dilated(h, W3, (1,), "VALID", dimension_numbers=dn)
    h = bn(h, bn3)
    return jax.nn.relu(h + x_ncl)


if __name__ == "__main__":
    # Module hyperparameters (downsample=None => in_planes must equal planes*4).
    in_planes, planes, groups, base_width = 32, 8, 32, 32
    width = int(math.floor(planes * (base_width / 64.0))) * groups   # 128
    out_planes = planes * 4                                          # 32
    cpg = width // groups                                            # 4
    B, L = 2, 16
    eps = 1e-5

    key = jax.random.PRNGKey(0)
    ks = jax.random.split(key, 16)

    # Deterministic synthetic parameters (PyTorch conv weight layouts: O, I, K).
    W1 = jax.random.normal(ks[0], (width, in_planes, 1), jnp.float32) * 0.1
    W2g = jax.random.normal(ks[1], (width, cpg, 3), jnp.float32) * 0.1
    W3 = jax.random.normal(ks[2], (out_planes, width, 1), jnp.float32) * 0.1

    def bn_params(k, c):
        k1, k2, k3, k4 = jax.random.split(k, 4)
        gamma = 1.0 + 0.1 * jax.random.normal(k1, (c,), jnp.float32)
        beta = 0.1 * jax.random.normal(k2, (c,), jnp.float32)
        mean = 0.1 * jax.random.normal(k3, (c,), jnp.float32)
        var = jnp.abs(jax.random.normal(k4, (c,), jnp.float32)) + 0.5
        return gamma, beta, mean, var

    bn1 = bn_params(ks[3], width)
    bn2 = bn_params(ks[4], width)
    bn3 = bn_params(ks[5], out_planes)

    x_ncl = jax.random.normal(ks[6], (B, in_planes, L), jnp.float32)

    # ---- glue: fold params into kernel-friendly shapes ----
    w1 = jnp.transpose(W1[:, :, 0], (1, 0))            # (Cin, W)
    w3 = jnp.transpose(W3[:, :, 0], (1, 0))            # (W, Cout)

    # grouped weight -> block-diagonal dense (3, W, W) -> flattened (3W, W)
    W2r = W2g.reshape(groups, cpg, cpg, 3)              # (g, co_g, ci_g, k)
    w2_dense = jnp.stack(
        [jax.scipy.linalg.block_diag(*[W2r[g, :, :, k].T for g in range(groups)])
         for k in range(3)], axis=0)                    # (3, W, W)
    w2_flat = w2_dense.reshape(3 * width, width)        # (3W, W) -> one K=3W dot

    def fold(p):
        gamma, beta, mean, var = p
        s = gamma / jnp.sqrt(var + eps)
        return s[None, :], (beta - mean * s)[None, :]

    s1, b1 = fold(bn1)
    s2, b2 = fold(bn2)
    s3, b3 = fold(bn3)

    x_blc = jnp.transpose(x_ncl, (0, 2, 1))             # NCL -> BLC

    ref = reference_forward(x_ncl, W1, W2g, W3, bn1, bn2, bn3, groups, eps)

    # ---- f32 path (tight tolerance) ----
    out_blc = resnext_bottleneck1d(x_blc, w1, w2_flat, w3,
                                   s1, b1, s2, b2, s3, b3)
    out_blc = jax.block_until_ready(out_blc)
    out_ncl = jnp.transpose(out_blc, (0, 2, 1))
    assert out_ncl.shape == (B, out_planes, L)
    assert jnp.allclose(out_ncl, ref, rtol=1e-4, atol=1e-4), (
        float(jnp.max(jnp.abs(out_ncl - ref))))

    # ---- bf16 activation/weight path (v6e/v7x MXU fast path), f32 BN/residual ----
    bf16 = jnp.bfloat16
    out_blc_b = resnext_bottleneck1d(
        x_blc.astype(bf16), w1.astype(bf16), w2_flat.astype(bf16), w3.astype(bf16),
        s1, b1, s2, b2, s3, b3)
    out_blc_b = jax.block_until_ready(out_blc_b)
    out_ncl_b = jnp.transpose(out_blc_b, (0, 2, 1)).astype(jnp.float32)
    assert jnp.allclose(out_ncl_b, ref, rtol=5e-2, atol=5e-2), (
        float(jnp.max(jnp.abs(out_ncl_b - ref))))

    print("KERNEL_OK")
</pallas_src>

<mosaic_0001>
module attributes {stable_mosaic.version = 11 : i64} {
  func.func @_bottleneck_kernel(%arg0: i32, %arg1: memref<32x32xf32, #tpu.memory_space<vmem>>, %arg2: memref<32x128xf32, #tpu.memory_space<vmem>>, %arg3: memref<384x128xf32, #tpu.memory_space<vmem>>, %arg4: memref<128x32xf32, #tpu.memory_space<vmem>>, %arg5: memref<1x128xf32, #tpu.memory_space<vmem>>, %arg6: memref<1x128xf32, #tpu.memory_space<vmem>>, %arg7: memref<1x128xf32, #tpu.memory_space<vmem>>, %arg8: memref<1x128xf32, #tpu.memory_space<vmem>>, %arg9: memref<1x32xf32, #tpu.memory_space<vmem>>, %arg10: memref<1x32xf32, #tpu.memory_space<vmem>>, %arg11: memref<32x32xf32, #tpu.memory_space<vmem>>) attributes {dimension_semantics = [#tpu.dimension_semantics<parallel>], iteration_bounds = array<i64: 1>, scalar_prefetch = 0 : i64, scratch_operands = 0 : i64, tpu.core_type = #tpu.core_type<tc>, window_params = [{transform_indices = @transform_0, window_bounds = array<i64: 32, 32>}, {pipeline_mode = #tpu.pipeline_mode<synchronous>, transform_indices = @transform_1, window_bounds = array<i64: 32, 128>}, {pipeline_mode = #tpu.pipeline_mode<synchronous>, transform_indices = @transform_2, window_bounds = array<i64: 384, 128>}, {pipeline_mode = #tpu.pipeline_mode<synchronous>, transform_indices = @transform_3, window_bounds = array<i64: 128, 32>}, {pipeline_mode = #tpu.pipeline_mode<synchronous>, transform_indices = @transform_4, window_bounds = array<i64: 1, 128>}, {pipeline_mode = #tpu.pipeline_mode<synchronous>, transform_indices = @transform_5, window_bounds = array<i64: 1, 128>}, {pipeline_mode = #tpu.pipeline_mode<synchronous>, transform_indices = @transform_6, window_bounds = array<i64: 1, 128>}, {pipeline_mode = #tpu.pipeline_mode<synchronous>, transform_indices = @transform_7, window_bounds = array<i64: 1, 128>}, {pipeline_mode = #tpu.pipeline_mode<synchronous>, transform_indices = @transform_8, window_bounds = array<i64: 1, 32>}, {pipeline_mode = #tpu.pipeline_mode<synchronous>, transform_indices = @transform_9, window_bounds = array<i64: 1, 32>}, {transform_indices = @transform_10, window_bounds = array<i64: 32, 32>}]} {
    %c0 = arith.constant 0 : index
    %c0_0 = arith.constant 0 : index
    %0 = vector.load %arg1[%c0, %c0_0] : memref<32x32xf32, #tpu.memory_space<vmem>>, vector<32x32xf32>
    %c0_1 = arith.constant 0 : index
    %c0_2 = arith.constant 0 : index
    %1 = vector.load %arg2[%c0_1, %c0_2] : memref<32x128xf32, #tpu.memory_space<vmem>>, vector<32x128xf32>
    %cst = arith.constant dense<0.000000e+00> : vector<32x128xf32>
    %2 = tpu.matmul %0, %1, %cst {dimension_numbers = #tpu.dot_dimension_numbers<[1], [0], [0], [1], [0, 0, 1, 1], [], []>} : vector<32x32xf32>, vector<32x128xf32>, vector<32x128xf32> -> vector<32x128xf32>
    %c0_3 = arith.constant 0 : index
    %c0_4 = arith.constant 0 : index
    %3 = vector.load %arg5[%c0_3, %c0_4] : memref<1x128xf32, #tpu.memory_space<vmem>>, vector<1x128xf32>
    %4 = vector.broadcast %3 : vector<1x128xf32> to vector<32x128xf32>
    %5 = arith.mulf %2, %4 : vector<32x128xf32>
    %c0_5 = arith.constant 0 : index
    %c0_6 = arith.constant 0 : index
    %6 = vector.load %arg6[%c0_5, %c0_6] : memref<1x128xf32, #tpu.memory_space<vmem>>, vector<1x128xf32>
    %7 = vector.broadcast %6 : vector<1x128xf32> to vector<32x128xf32>
    %8 = arith.addf %5, %7 : vector<32x128xf32>
    %cst_7 = arith.constant 0.000000e+00 : f32
    %9 = vector.broadcast %cst_7 : f32 to vector<32x128xf32>
    %10 = arith.maximumf %8, %9 : vector<32x128xf32>
    %11 = tpu.iota {dimensions = array<i32: 0>} : vector<32x1xi32>
    %c16_i32 = arith.constant 16 : i32
    %c0_i32 = arith.constant 0 : i32
    %12 = arith.cmpi eq, %c16_i32, %c0_i32 : i32
    %c1_i32 = arith.constant 1 : i32
    %13 = arith.select %12, %c1_i32, %c16_i32 : i32
    %14 = vector.broadcast %13 : i32 to vector<32x1xi32>
    %15 = arith.remsi %11, %14 : vector<32x1xi32>
    %c0_i32_8 = arith.constant 0 : i32
    %16 = vector.broadcast %c0_i32_8 : i32 to vector<32x1xi32>
    %17 = arith.cmpi ne, %15, %16 : vector<32x1xi32>
    %c0_i32_9 = arith.constant 0 : i32
    %18 = vector.broadcast %c0_i32_9 : i32 to vector<32x1xi32>
    %19 = arith.cmpi slt, %15, %18 : vector<32x1xi32>
    %c0_i32_10 = arith.constant 0 : i32
    %20 = arith.cmpi slt, %13, %c0_i32_10 : i32
    %21 = vector.broadcast %20 : i1 to vector<32x1xi1>
    %22 = vector.broadcast %21 : vector<32x1xi1> to vector<32x1xi1>
    %23 = arith.xori %19, %22 : vector<32x1xi1>
    %24 = arith.andi %23, %17 : vector<32x1xi1>
    %25 = vector.broadcast %13 : i32 to vector<32x1xi32>
    %26 = arith.addi %15, %25 : vector<32x1xi32>
    %27 = arith.select %24, %26, %15 : vector<32x1xi1>, vector<32x1xi32>
    %c0_i32_11 = arith.constant 0 : i32
    %28 = vector.broadcast %c0_i32_11 : i32 to vector<32x1xi32>
    %29 = arith.cmpi eq, %27, %28 : vector<32x1xi32>
    %30 = vector.extract_strided_slice %10 {offsets = [31, 0], sizes = [1, 128], strides = [1, 1]} : vector<32x128xf32> to vector<1x128xf32>
    %31 = vector.extract_strided_slice %10 {offsets = [0, 0], sizes = [31, 128], strides = [1, 1]} : vector<32x128xf32> to vector<31x128xf32>
    %32 = tpu.concatenate %30, %31 in 0 : vector<1x128xf32>, vector<31x128xf32> -> vector<32x128xf32>
    %cst_12 = arith.constant 0.000000e+00 : f32
    %33 = vector.shape_cast %29 : vector<32x1xi1> to vector<32x1xi1>
    %34 = vector.broadcast %33 : vector<32x1xi1> to vector<32x128xi1>
    %35 = vector.broadcast %cst_12 : f32 to vector<32x128xf32>
    %36 = arith.select %34, %35, %32 : vector<32x128xi1>, vector<32x128xf32>
    %c15_i32 = arith.constant 15 : i32
    %37 = vector.broadcast %c15_i32 : i32 to vector<32x1xi32>
    %38 = arith.cmpi eq, %27, %37 : vector<32x1xi32>
    %39 = vector.extract_strided_slice %10 {offsets = [1, 0], sizes = [31, 128], strides = [1, 1]} : vector<32x128xf32> to vector<31x128xf32>
    %40 = vector.extract_strided_slice %10 {offsets = [0, 0], sizes = [1, 128], strides = [1, 1]} : vector<32x128xf32> to vector<1x128xf32>
    %41 = tpu.concatenate %39, %40 in 0 : vector<31x128xf32>, vector<1x128xf32> -> vector<32x128xf32>
    %cst_13 = arith.constant 0.000000e+00 : f32
    %42 = vector.shape_cast %38 : vector<32x1xi1> to vector<32x1xi1>
    %43 = vector.broadcast %42 : vector<32x1xi1> to vector<32x128xi1>
    %44 = vector.broadcast %cst_13 : f32 to vector<32x128xf32>
    %45 = arith.select %43, %44, %41 : vector<32x128xi1>, vector<32x128xf32>
    %46 = tpu.concatenate %36, %10, %45 in 1 : vector<32x128xf32>, vector<32x128xf32>, vector<32x128xf32> -> vector<32x384xf32>
    %c0_14 = arith.constant 0 : index
    %c0_15 = arith.constant 0 : index
    %47 = vector.load %arg3[%c0_14, %c0_15] : memref<384x128xf32, #tpu.memory_space<vmem>>, vector<384x128xf32>
    %cst_16 = arith.constant dense<0.000000e+00> : vector<32x128xf32>
    %48 = tpu.matmul %46, %47, %cst_16 {dimension_numbers = #tpu.dot_dimension_numbers<[1], [0], [0], [1], [0, 0, 1, 1], [], []>} : vector<32x384xf32>, vector<384x128xf32>, vector<32x128xf32> -> vector<32x128xf32>
    %c0_17 = arith.constant 0 : index
    %c0_18 = arith.constant 0 : index
    %49 = vector.load %arg7[%c0_17, %c0_18] : memref<1x128xf32, #tpu.memory_space<vmem>>, vector<1x128xf32>
    %50 = vector.broadcast %49 : vector<1x128xf32> to vector<32x128xf32>
    %51 = arith.mulf %48, %50 : vector<32x128xf32>
    %c0_19 = arith.constant 0 : index
    %c0_20 = arith.constant 0 : index
    %52 = vector.load %arg8[%c0_19, %c0_20] : memref<1x128xf32, #tpu.memory_space<vmem>>, vector<1x128xf32>
    %53 = vector.broadcast %52 : vector<1x128xf32> to vector<32x128xf32>
    %54 = arith.addf %51, %53 : vector<32x128xf32>
    %cst_21 = arith.constant 0.000000e+00 : f32
    %55 = vector.broadcast %cst_21 : f32 to vector<32x128xf32>
    %56 = arith.maximumf %54, %55 : vector<32x128xf32>
    %c0_22 = arith.constant 0 : index
    %c0_23 = arith.constant 0 : index
    %57 = vector.load %arg4[%c0_22, %c0_23] : memref<128x32xf32, #tpu.memory_space<vmem>>, vector<128x32xf32>
    %cst_24 = arith.constant dense<0.000000e+00> : vector<32x32xf32>
    %58 = tpu.matmul %56, %57, %cst_24 {dimension_numbers = #tpu.dot_dimension_numbers<[1], [0], [0], [1], [0, 0, 1, 1], [], []>} : vector<32x128xf32>, vector<128x32xf32>, vector<32x32xf32> -> vector<32x32xf32>
    %c0_25 = arith.constant 0 : index
    %c0_26 = arith.constant 0 : index
    %59 = vector.load %arg9[%c0_25, %c0_26] : memref<1x32xf32, #tpu.memory_space<vmem>>, vector<1x32xf32>
    %60 = vector.broadcast %59 : vector<1x32xf32> to vector<32x32xf32>
    %61 = arith.mulf %58, %60 : vector<32x32xf32>
    %c0_27 = arith.constant 0 : index
    %c0_28 = arith.constant 0 : index
    %62 = vector.load %arg10[%c0_27, %c0_28] : memref<1x32xf32, #tpu.memory_space<vmem>>, vector<1x32xf32>
    %63 = vector.broadcast %62 : vector<1x32xf32> to vector<32x32xf32>
    %64 = arith.addf %61, %63 : vector<32x32xf32>
    %65 = arith.addf %64, %0 : vector<32x32xf32>
    %cst_29 = arith.constant 0.000000e+00 : f32
    %66 = vector.broadcast %cst_29 : f32 to vector<32x32xf32>
    %67 = arith.maximumf %65, %66 : vector<32x32xf32>
    %c0_30 = arith.constant 0 : index
    %c0_31 = arith.constant 0 : index
    %68 = vector.load %arg11[%c0_30, %c0_31] : memref<32x32xf32, #tpu.memory_space<vmem>>, vector<32x32xf32>
    tpu.vector_store %arg11[%c0_30, %c0_31], %67 {strides = array<i32>} : memref<32x32xf32, #tpu.memory_space<vmem>>, vector<32x32xf32>,
    return
  }
  func.func @transform_0(%arg0: i32) -> (i32, i32) {
    %c0_i32 = arith.constant 0 : i32
    %c0_i32_0 = arith.constant 0 : i32
    return %arg0, %c0_i32 : i32, i32
  }
  func.func @transform_1(%arg0: i32) -> (i32, i32) {
    %c0_i32 = arith.constant 0 : i32
    %c0_i32_0 = arith.constant 0 : i32
    %c0_i32_1 = arith.constant 0 : i32
    return %c0_i32, %c0_i32_0 : i32, i32
  }
  func.func @transform_2(%arg0: i32) -> (i32, i32) {
    %c0_i32 = arith.constant 0 : i32
    %c0_i32_0 = arith.constant 0 : i32
    %c0_i32_1 = arith.constant 0 : i32
    return %c0_i32, %c0_i32_0 : i32, i32
  }
  func.func @transform_3(%arg0: i32) -> (i32, i32) {
    %c0_i32 = arith.constant 0 : i32
    %c0_i32_0 = arith.constant 0 : i32
    %c0_i32_1 = arith.constant 0 : i32
    return %c0_i32, %c0_i32_0 : i32, i32
  }
  func.func @transform_4(%arg0: i32) -> (i32, i32) {
    %c0_i32 = arith.constant 0 : i32
    %c0_i32_0 = arith.constant 0 : i32
    %c0_i32_1 = arith.constant 0 : i32
    return %c0_i32, %c0_i32_0 : i32, i32
  }
  func.func @transform_5(%arg0: i32) -> (i32, i32) {
    %c0_i32 = arith.constant 0 : i32
    %c0_i32_0 = arith.constant 0 : i32
    %c0_i32_1 = arith.constant 0 : i32
    return %c0_i32, %c0_i32_0 : i32, i32
  }
  func.func @transform_6(%arg0: i32) -> (i32, i32) {
    %c0_i32 = arith.constant 0 : i32
    %c0_i32_0 = arith.constant 0 : i32
    %c0_i32_1 = arith.constant 0 : i32
    return %c0_i32, %c0_i32_0 : i32, i32
  }
  func.func @transform_7(%arg0: i32) -> (i32, i32) {
    %c0_i32 = arith.constant 0 : i32
    %c0_i32_0 = arith.constant 0 : i32
    %c0_i32_1 = arith.constant 0 : i32
    return %c0_i32, %c0_i32_0 : i32, i32
  }
  func.func @transform_8(%arg0: i32) -> (i32, i32) {
    %c0_i32 = arith.constant 0 : i32
    %c0_i32_0 = arith.constant 0 : i32
    %c0_i32_1 = arith.constant 0 : i32
    return %c0_i32, %c0_i32_0 : i32, i32
  }
  func.func @transform_9(%arg0: i32) -> (i32, i32) {
    %c0_i32 = arith.constant 0 : i32
    %c0_i32_0 = arith.constant 0 : i32
    %c0_i32_1 = arith.constant 0 : i32
    return %c0_i32, %c0_i32_0 : i32, i32
  }
  func.func @transform_10(%arg0: i32) -> (i32, i32) {
    %c0_i32 = arith.constant 0 : i32
    %c0_i32_0 = arith.constant 0 : i32
    return %arg0, %c0_i32 : i32, i32
  }
}

</mosaic_0001>

<bundles_post_ra>
// kernel: tpu_custom_call.1
= control target key start
LH: loop header
LB: loop body
LE: loop exit
PB: predicated region body
PF: predicated region fallthrough
CT: control target
= control target key end

     0   :  { %15 = vsyncpa [#allocation3], 0  ;;  %s1266_s0 = inlined_call_operand.vmem [shape: f32[32,32], index: 0, kind: input, shape index: {}]   ;;  %s1267_s1 = inlined_call_operand.vmem [shape: f32[32,128], index: 1, kind: input, shape index: {}]   ;;  %s1268_s2 = inlined_call_operand.hbm [shape: f32[384,128], index: 2, kind: input, shape index: {}]   ;;  %s1269_s3 = inlined_call_operand.vmem [shape: f32[128,32], index: 3, kind: input, shape index: {}]   ;;  %s1270_s4 = inlined_call_operand.vmem [shape: f32[1,128], index: 4, kind: input, shape index: {}]   ;;  %s1271_s5 = inlined_call_operand.vmem [shape: f32[1,128], index: 5, kind: input, shape index: {}]   ;;  %s1272_s6 = inlined_call_operand.vmem [shape: f32[1,128], index: 6, kind: input, shape index: {}]   ;;  %s1273_s7 = inlined_call_operand.vmem [shape: f32[1,128], index: 7, kind: input, shape index: {}]   ;;  %s1274_s8 = inlined_call_operand.vmem [shape: f32[1,32], index: 8, kind: input, shape index: {}]   ;;  %s1275_s9 = inlined_call_operand.vmem [shape: f32[1,32], index: 9, kind: input, shape index: {}]   ;;  %s1276_s10 = inlined_call_operand.hbm [shape: f32[32,32], index: 10, kind: output, shape index: {}]  }
   0x1   :  { %16 = vsyncpa [#allocation4], 0  ;;  %s1055_s13 = smov [#allocation2]   ;;  %s1007_s17 = scalar_lea.hbm %s1268_s2, 6144 }
   0x2   :  { %s26_s14 = sshll.u32 %s1055_s13, 4  ;;  %p1008_p0 = scmp.ne.s32.totalorder %s1268_s2, %s1007_s17  ;;  %s27_s14 = int_to_ptr.vmem [resolvable:$true] %s26_s14 }
   0x3   :  { %p1011_p1 = scmp.lt.u32.totalorder %s1007_s17, %s1268_s2 }
   0x5   :  { %p1013_p2 = pnand %p1011_p1, %p1008_p0 }
   0x7   :  { %1016 = shalt.err (!%p1013_p2)
}
   0x8   :  { %s1017_s22 = scalar_lea.vmem %s27_s14, 6144  ;;  %p1022_p4 = scmp.lt.s32.totalorder %s27_s14, %s27_s14 }
   0x9   :  { %p1018_p3 = scmp.ne.s32.totalorder %s27_s14, %s1017_s22  ;;  %p1023_p5 = scmp.lt.s32.totalorder %s1017_s22, %s1017_s22 }
   0xb   :  { %p1024_p6 = por %p1023_p5, %p1022_p4 }
   0xd   :  { %p1025_p7 = pnand %p1024_p6, %p1018_p3 }
   0xf   :  { %1028 = shalt.err (!%p1025_p7)
}
  0x10   :  { %s1056_s23 = smov 128   ;;  %s1057_s24 = smov 8  }
  0x11   :  { %32 = dma.hbm_to_vmem [thread:$0]  %s1268_s2, 6144, %s27_s14, [#allocation3], %s1056_s23, %s1056_s23, %s1057_s24  }
  0x12   :  { %1051 = dma.done.wait [#allocation3], 6144  }
  0x13   :  { %1052 = vsyncadd [#allocation3], 4294961152  ;;  %vm58_vm0 = vcmask 261120   ;;  %v54_v0 = vld [vmem:[%s1267_s1] sm:$0xff]  ;;  %v55_v1 = vld [vmem:[%s1267_s1 + $0x8] sm:$0xff]  ;;  %vm273_vm1 = vcmask 1046528  }
  0x14   :  { %v56_v2 = vld [vmem:[%s1267_s1 + $0x10] sm:$0xff]  ;;  %v899_v3 = vpack.c.bf16 %v55_v1, %v54_v0  ;;  %v57_v4 = vld [vmem:[%s1267_s1 + $0x18] sm:$0xff]  ;;  %v1144_v5 = vld [vmem:[%s1266_s0] sm:$0xff]  ;;  %vm245_vm2 = vcmask 1040384  }
  0x15   :  { %v903_v6 = vpack.c.bf16 %v57_v4, %v56_v2  ;;  %817 = vmatprep.mubr.msk.f32.mxu0 %vm58_vm0, %v1144_v5  ;;  %v315_v7 = vld [vmem:[#allocation2 + $0x80] sm:$0xff]  ;;  %v316_v8 = vld [vmem:[#allocation2 + $0x88] sm:$0xff]  ;;  %v317_v15 = vld [vmem:[#allocation2 + $0x90] sm:$0xff] }
  0x16   :  { %900 = vmatprep.subr.bf16.mxu0 %v899_v3  ;;  %v299_v9 = vld [vmem:[#allocation2] sm:$0xff]  ;;  %v300_v10 = vld [vmem:[#allocation2 + $0x8] sm:$0xff]  ;;  %v907_v11 = vpack.c.bf16 %v316_v8, %v315_v7  ;;  %v318_v17 = vld [vmem:[#allocation2 + $0x98] sm:$0xff] }
  0x17   :  { %902 = vmatpush3.bf16.msra.mxu0 %v899_v3  ;;  %v909_v12 = vpack.c.bf16 %v300_v10, %v299_v9  ;;  %v331_v13 = vld [vmem:[#allocation2 + $0x100] sm:$0xff]  ;;  %v332_v14 = vld [vmem:[#allocation2 + $0x108] sm:$0xff]  ;;  %v301_v18 = vld [vmem:[#allocation2 + $0x10] sm:$0xff]  ;;  %v911_v20 = vpack.c.bf16 %v318_v17, %v317_v15 }
  0x18   :  { %904 = vmatprep.subr.bf16.mxu0 %v903_v6  ;;  %v939_v16 = vpack.c.bf16 %v332_v14, %v331_v13  ;;  %v302_v19 = vld [vmem:[#allocation2 + $0x18] sm:$0xff]  ;;  %908 = vmatprep.subr.bf16.mxu1 %v907_v11  ;;  %v333_v21 = vld [vmem:[#allocation2 + $0x110] sm:$0xff]  ;;  %v319_v23 = vld [vmem:[#allocation2 + $0xa0] sm:$0xff] }
  0x19   :  { %v334_v22 = vld [vmem:[#allocation2 + $0x118] sm:$0xff]  ;;  %910 = vmatpush3.bf16.msra.mxu1 %v909_v12  ;;  %v913_v24 = vpack.c.bf16 %v302_v19, %v301_v18  ;;  %v320_v25 = vld [vmem:[#allocation2 + $0xa8] sm:$0xff]  ;;  %v303_v27 = vld [vmem:[#allocation2 + $0x20] sm:$0xff] }
  0x1a   :  { %v1151_v26 = vld [vmem:[%s1266_s0 + $0x8] sm:$0xff]  ;;  %912 = vmatprep.subr.bf16.mxu1 %v911_v20  ;;  %v1156_v29 = vld [vmem:[%s1266_s0 + $0x10] sm:$0xff]  ;;  %v943_v30 = vpack.c.bf16 %v334_v22, %v333_v21  ;;  %v915_v31 = vpack.c.bf16 %v320_v25, %v319_v23  ;;  %v322_v33 = vld [vmem:[#allocation2 + $0xb8] sm:$0xff]  ;;  %v182_v22 = vlaneseq }
  0x1b   :  { %906 = vmatpush3.bf16.msra.mxu0 %v903_v6  ;;  %v304_v28 = vld [vmem:[#allocation2 + $0x28] sm:$0xff]  ;;  %v321_v32 = vld [vmem:[#allocation2 + $0xb0] sm:$0xff]  ;;  %v335_v34 = vld [vmem:[#allocation2 + $0x120] sm:$0xff] }
  0x1c   :  { %940 = vmatprep.subr.bf16.mxu0 %v939_v16  ;;  %v336_v35 = vld [vmem:[#allocation2 + $0x128] sm:$0xff]  ;;  %v917_v36 = vpack.c.bf16 %v304_v28, %v303_v27  ;;  %v1165_v37 = vld [vmem:[%s1266_s0 + $0x18] sm:$0xff]  ;;  %v919_v38 = vpack.c.bf16 %v322_v33, %v321_v32  ;;  %v305_v39 = vld [vmem:[#allocation2 + $0x30] sm:$0xff] }
  0x1d   :  { %914 = vmatpush3.bf16.msra.mxu1 %v913_v24  ;;  %v306_v40 = vld [vmem:[#allocation2 + $0x38] sm:$0xff]  ;;  %v947_v41 = vpack.c.bf16 %v336_v35, %v335_v34  ;;  %v323_v42 = vld [vmem:[#allocation2 + $0xc0] sm:$0xff]  ;;  %v324_v43 = vld [vmem:[#allocation2 + $0xc8] sm:$0xff]  ;;  %v183_v24 = vshrl.u32 %v182_v22, 7 }
  0x1e   :  { %818 = vmatmul.mubr.msk.f32.vlgmr.msra.gmra.mrb[0].mxu0 %vm58_vm0, %v1151_v26  ;;  %916 = vmatprep.subr.bf16.mxu1 %v915_v31  ;;  %v337_v44 = vld [vmem:[#allocation2 + $0x130] sm:$0xff]  ;;  %v338_v45 = vld [vmem:[#allocation2 + $0x138] sm:$0xff]  ;;  %v921_v46 = vpack.c.bf16 %v306_v40, %v305_v39  ;;  %v923_v47 = vpack.c.bf16 %v324_v43, %v323_v42  ;;  %v307_v48 = vld [vmem:[#allocation2 + $0x40] sm:$0xff] }
  0x1f   :  { %820 = vmatprep.mubr.msk.f32.mxu0 %vm58_vm0, %v1156_v29  ;;  %942 = vmatpush3.bf16.msra.mxu0 %v939_v16  ;;  %v308_v49 = vld [vmem:[#allocation2 + $0x48] sm:$0xff]  ;;  %v951_v50 = vpack.c.bf16 %v338_v45, %v337_v44  ;;  %v339_v51 = vld [vmem:[#allocation2 + $0x140] sm:$0xff]  ;;  %v325_v55 = vld [vmem:[#allocation2 + $0xd0] sm:$0xff]  ;;  %v184_v33 = vadd.s32 8, %v183_v24  ;;  %v191_v42 = vand.u32 15, %v183_v24 }
  0x20   :  { %944 = vmatprep.subr.bf16.mxu0 %v943_v30  ;;  %v340_v52 = vld [vmem:[#allocation2 + $0x148] sm:$0xff]  ;;  %v925_v53 = vpack.c.bf16 %v308_v49, %v307_v48  ;;  %v326_v56 = vld [vmem:[#allocation2 + $0xd8] sm:$0xff]  ;;  %v309_v58 = vld [vmem:[#allocation2 + $0x50] sm:$0xff] }
  0x21   :  { %918 = vmatpush3.bf16.msra.mxu1 %v917_v36  ;;  %v955_v54 = vpack.c.bf16 %v340_v52, %v339_v51  ;;  %v927_v57 = vpack.c.bf16 %v326_v56, %v325_v55  ;;  %v310_v59 = vld [vmem:[#allocation2 + $0x58] sm:$0xff]  ;;  %v341_v61 = vld [vmem:[#allocation2 + $0x150] sm:$0xff]  ;;  %v327_v0 = vld [vmem:[#allocation2 + $0xe0] sm:$0xff]  ;;  %v198_v45 = vand.u32 15, %v184_v33  ;;  %vm713_vm3 = vcmp.ne.s32.totalorder %v191_v42, 0 }
  0x22   :  { %821 = vmatmul.mubr.msk.f32.gmra.mrb[2].mxu0 %vm58_vm0, %v1165_v37  ;;  %920 = vmatprep.subr.bf16.mxu1 %v919_v38  ;;  %v929_v60 = vpack.c.bf16 %v310_v59, %v309_v58  ;;  %v342_v62 = vld [vmem:[#allocation2 + $0x158] sm:$0xff]  ;;  %v328_v1 = vld [vmem:[#allocation2 + $0xe8] sm:$0xff]  ;;  %v311_v3 = vld [vmem:[#allocation2 + $0x60] sm:$0xff]  ;;  %v185_v59 = vadd.s32 16, %v183_v24 }
  0x23   :  { %946 = vmatpush3.bf16.msra.mxu0 %v943_v30  ;;  %v959_v63 = vpack.c.bf16 %v342_v62, %v341_v61  ;;  %v931_v2 = vpack.c.bf16 %v328_v1, %v327_v0  ;;  %v312_v4 = vld [vmem:[#allocation2 + $0x68] sm:$0xff]  ;;  %v343_v6 = vld [vmem:[#allocation2 + $0x160] sm:$0xff]  ;;  %v329_v10 = vld [vmem:[#allocation2 + $0xf0] sm:$0xff]  ;;  %vm715_vm4 = vcmp.ne.s32.totalorder %v198_v45, 15 }
  0x24   :  { %948 = vmatprep.subr.bf16.mxu0 %v947_v41  ;;  %v933_v7 = vpack.c.bf16 %v312_v4, %v311_v3  ;;  %v344_v8 = vld [vmem:[#allocation2 + $0x168] sm:$0xff]  ;;  %v330_v11 = vld [vmem:[#allocation2 + $0xf8] sm:$0xff]  ;;  %v313_v13 = vld [vmem:[#allocation2 + $0x70] sm:$0xff] }
  0x25   :  { %922 = vmatpush3.bf16.msra.mxu1 %v921_v46  ;;  %v963_v9 = vpack.c.bf16 %v344_v8, %v343_v6  ;;  %v935_v12 = vpack.c.bf16 %v330_v11, %v329_v10  ;;  %v314_v14 = vld [vmem:[#allocation2 + $0x78] sm:$0xff]  ;;  %v345_v15 = vld [vmem:[#allocation2 + $0x170] sm:$0xff]  ;;  %v543_v19 = vld [vmem:[%s1269_s3] sm:$0xff] }
  0x26   :  { %924 = vmatprep.subr.bf16.mxu1 %v923_v47  ;;  %v937_v16 = vpack.c.bf16 %v314_v14, %v313_v13  ;;  %v346_v17 = vld [vmem:[#allocation2 + $0x178] sm:$0xff]  ;;  %v544_v20 = vld [vmem:[%s1269_s3 + $0x8] sm:$0xff]  ;;  %v699_v23 = vld [vmem:[%s1270_s4] ss:$0 sm:$0xff] }
  0x27   :  { %950 = vmatpush3.bf16.msra.mxu0 %v947_v41  ;;  %v967_v18 = vpack.c.bf16 %v346_v17, %v345_v15  ;;  %v971_v21 = vpack.c.bf16 %v544_v20, %v543_v19  ;;  %v700_v27 = vld [vmem:[%s1271_s5] ss:$0 sm:$0xff]  ;;  %v545_v55 = vld [vmem:[%s1269_s3 + $0x10] sm:$0xff]  ;;  %v546_v56 = vld [vmem:[%s1269_s3 + $0x18] sm:$0xff] }
  0x28   :  { %952 = vmatprep.subr.bf16.mxu0 %v951_v50  ;;  %v975_v1 = vpack.c.bf16 %v546_v56, %v545_v55  ;;  %v548_v8 = vld [vmem:[%s1269_s3 + $0x28] sm:$0xff]  ;;  %v549_v11 = vld [vmem:[%s1269_s3 + $0x30] sm:$0xff]  ;;  %v551_v14 = vld [vmem:[%s1269_s3 + $0x40] sm:$0xff] }
  0x29   :  { %926 = vmatpush3.bf16.msra.mxu1 %v925_v53  ;;  %v552_v15 = vld [vmem:[%s1269_s3 + $0x48] sm:$0xff]  ;;  %v553_v17 = vld [vmem:[%s1269_s3 + $0x50] sm:$0xff]  ;;  %v555_v20 = vld [vmem:[%s1269_s3 + $0x60] sm:$0xff] }
  0x2a   :  { %928 = vmatprep.subr.bf16.mxu1 %v927_v57  ;;  %v709_v33 = vld [vmem:[%s1272_s6] ss:$0 sm:$0xff] }
  0x2b   :  { %954 = vmatpush3.bf16.msra.mxu0 %v951_v50  ;;  %v186_v50 = vadd.s32 24, %v183_v24  ;;  %v558_v24 = vld [vmem:[%s1269_s3 + $0x78] sm:$0xff] }
  0x2c   :  { %956 = vmatprep.subr.bf16.mxu0 %v955_v54 }
  0x2d   :  { %930 = vmatpush3.bf16.msra.mxu1 %v929_v60  ;;  %v212_v62 = vand.u32 15, %v186_v50 }
  0x2e   :  { %932 = vmatprep.subr.bf16.mxu1 %v931_v2 }
  0x2f   :  { %958 = vmatpush3.bf16.msra.mxu0 %v955_v54  ;;  %vm716_vm5 = vcmp.ne.s32.totalorder %v212_v62, 15 }
  0x30   :  { %960 = vmatprep.subr.bf16.mxu0 %v959_v63 }
  0x31   :  { %934 = vmatpush3.bf16.msra.mxu1 %v933_v7  ;;  %v547_v7 = vld [vmem:[%s1269_s3 + $0x20] sm:$0xff] }
  0x32   :  { %936 = vmatprep.subr.bf16.mxu1 %v935_v12  ;;  %v979_v10 = vpack.c.bf16 %v548_v8, %v547_v7  ;;  %v550_v12 = vld [vmem:[%s1269_s3 + $0x38] sm:$0xff] }
  0x33   :  { %962 = vmatpush3.bf16.msra.mxu0 %v959_v63  ;;  %v983_v13 = vpack.c.bf16 %v550_v12, %v549_v11 }
  0x34   :  { %964 = vmatprep.subr.bf16.mxu0 %v963_v9 }
  0x35   :  { %938 = vmatpush3.bf16.msra.mxu1 %v937_v16  ;;  %v987_v16 = vpack.c.bf16 %v552_v15, %v551_v14 }
  0x36   :  { %972 = vmatprep.subr.bf16.mxu1 %v971_v21 }
  0x37   :  { %966 = vmatpush3.bf16.msra.mxu0 %v963_v9  ;;  %v205_v9 = vand.u32 15, %v185_v59 }
  0x38   :  { %968 = vmatprep.subr.bf16.mxu0 %v967_v18 }
  0x39   :  { %vm714_vm6 = vcmp.ne.s32.totalorder %v205_v9, 0 }
  0x3b   :  { %970 = vmatpush3.bf16.msra.mxu0 %v967_v18  ;;  %v554_v18 = vld [vmem:[%s1269_s3 + $0x58] sm:$0xff] }
  0x3c   :  { %v991_v19 = vpack.c.bf16 %v554_v18, %v553_v17 }
  0xf1   :  { %v819_v25 = vpop.f32.mrb[0].mxu0 }
  0xf2   :  { %v164_v28 = vmul.f32 %v819_v25, %v699_v23  ;;  %v137_v30 = vpop.f32.mrb[1].mxu0 }
  0xf3   :  { %v163_v31 = vmul.f32 %v699_v23, %v137_v30 }
  0xf4   :  { %v175_v32 = vadd.f32 %v700_v27, %v164_v28 }
  0xf5   :  { %v174_v34 = vadd.f32 %v700_v27, %v163_v31  ;;  %v822_v35 = vpop.f32.mrb[2].mxu0 }
  0xf6   :  { %v179_v36 = vmax.f32 %v175_v32, 0.0  ;;  %v166_v38 = vmul.f32 %v822_v35, %v699_v23  ;;  %v147_v39 = vpop.f32.mrb[3].mxu0 }
  0xf7   :  { %v178_v40 = vmax.f32 %v174_v34, 0.0  ;;  %v165_v41 = vmul.f32 %v699_v23, %v147_v39  ;;  %v557_v23 = vld [vmem:[%s1269_s3 + $0x70] sm:$0xff] }
  0xf8   :  { %v177_v43 = vadd.f32 %v700_v27, %v166_v38  ;;  %v275_v44 = vrot.slane %v179_v36, 1  ;;  %v247_v46 = vrot.slane %v179_v36, 7  ;;  %v999_v25 = vpack.c.bf16 %v558_v24, %v557_v23  ;;  %v710_v38 = vld [vmem:[%s1273_s7] ss:$0 sm:$0xff] }
  0xf9   :  { %v246_v47 = vrot.slane %v178_v40, 7  ;;  %v176_v48 = vadd.f32 %v700_v27, %v165_v41  ;;  %411 = vmatprep.mubr.f32.mxu1 %v178_v40  ;;  %v274_v49 = vrot.slane %v178_v40, 1 }
  0xfa   :  { %v181_v51 = vmax.f32 %v177_v43, 0.0 }
  0xfb   :  { %v180_v52 = vmax.f32 %v176_v48, 0.0  ;;  %v276_v53 = vsel %vm273_vm1, %v274_v49, %v275_v44  ;;  %v248_v54 = vsel %vm245_vm2, %v246_v47, %v247_v46 }
  0xfc   :  { %v240_v57 = vrot.slane %v181_v51, 7  ;;  %855 = vmatprep.mubr.f32.mxu0 %v276_v53  ;;  %v279_v58 = vrot.slane %v181_v51, 1 }
  0xfd   :  { %v249_v60 = vrot.slane %v180_v52, 7  ;;  %v277_v61 = vrot.slane %v180_v52, 1 }
  0xfe   :  { %v256_v63 = vsel %vm245_vm2, %v240_v57, %v246_v47  ;;  %v286_v0 = vsel %vm273_vm1, %v279_v58, %v274_v49 }
  0xff   :  { %702 = vmatmul.mubr.msk.f32.vlgmr.msra.gmra.mrb[0].mxu1 %vm713_vm3, %v256_v63  ;;  %v278_v2 = vsel %vm273_vm1, %v275_v44, %v277_v61  ;;  %v280_v3 = vsel %vm273_vm1, %v277_v61, %v279_v58  ;;  %v250_v4 = vsel %vm245_vm2, %v247_v46, %v249_v60  ;;  %v251_v6 = vsel %vm245_vm2, %v249_v60, %v240_v57  ;;  %v711_v63 = vld [vmem:[%s1274_s8] ss:$0 sm:$0xff]  ;;  %s1058_s8 = smov [#allocation5]  }
 0x100   :  { %416 = vmatprep.mubr.f32.mxu1 %v179_v36  ;;  %856 = vmatmul.mubr.msk.f32.vlgmr.msra.gmra.mrb[4].mxu0 %vm715_vm4, %v278_v2 }
 0x101   :  { %858 = vmatprep.mubr.f32.mxu0 %v280_v3  ;;  %974 = vmatpush3.bf16.msra.mxu1 %v971_v21  ;;  %v556_v21 = vld [vmem:[%s1269_s3 + $0x68] sm:$0xff] }
 0x102   :  { %976 = vmatprep.subr.bf16.mxu1 %v975_v1  ;;  %v995_v22 = vpack.c.bf16 %v556_v21, %v555_v20 }
 0x103   :  { %417 = vmatmul.mubr.f32.gmra.mrb[2].mxu1 %v248_v54 }
 0x104   :  { %421 = vmatprep.mubr.f32.mxu1 %v180_v52  ;;  %859 = vmatmul.mubr.msk.f32.gmra.mrb[6].mxu0 %vm716_vm5, %v286_v0 }
 0x105   :  { %978 = vmatpush3.bf16.msra.mxu1 %v975_v1  ;;  %v712_v1 = vld [vmem:[%s1275_s9] ss:$0 sm:$0xff]  ;;  %s683_s9 = sshll.u32 %s1058_s8, 4  ;;  %s684_s9 = int_to_ptr.vmem [resolvable:$true] %s683_s9 }
 0x106   :  { %980 = vmatprep.subr.bf16.mxu1 %v979_v10  ;;  %s1029_s16 = scalar_lea.vmem %s684_s9, 512  ;;  %p1034_p9 = scmp.lt.s32.totalorder %s684_s9, %s684_s9 }
 0x107   :  { %704 = vmatmul.mubr.msk.f32.gmra.mrb[4].mxu1 %vm714_vm6, %v250_v4  ;;  %p1030_p8 = scmp.ne.s32.totalorder %s684_s9, %s1029_s16  ;;  %p1035_p10 = scmp.lt.s32.totalorder %s1029_s16, %s1029_s16 }
 0x108   :  { %426 = vmatprep.mubr.f32.mxu1 %v181_v51 }
 0x109   :  { %982 = vmatpush3.bf16.msra.mxu1 %v979_v10  ;;  %p1036_p11 = por %p1035_p10, %p1034_p9 }
 0x10a   :  { %984 = vmatprep.subr.bf16.mxu1 %v983_v13 }
 0x10b   :  { %427 = vmatmul.mubr.f32.gmra.mrb[6].mxu1 %v251_v6  ;;  %p1037_p12 = pnand %p1036_p11, %p1030_p8 }
 0x10d   :  { %986 = vmatpush3.bf16.msra.mxu1 %v983_v13 }
 0x10e   :  { %988 = vmatprep.subr.bf16.mxu1 %v987_v16 }
 0x111   :  { %990 = vmatpush3.bf16.msra.mxu1 %v987_v16 }
 0x112   :  { %992 = vmatprep.subr.bf16.mxu1 %v991_v19 }
 0x115   :  { %994 = vmatpush3.bf16.msra.mxu1 %v991_v19 }
 0x116   :  { %996 = vmatprep.subr.bf16.mxu1 %v995_v22 }
 0x119   :  { %998 = vmatpush3.bf16.msra.mxu1 %v995_v22 }
 0x11a   :  { %1000 = vmatprep.subr.bf16.mxu1 %v999_v25 }
 0x11d   :  { %1002 = vmatpush3.bf16.msra.mxu1 %v999_v25 }
 0x1d2   :  { %v757_v27 = vpop.f32.mrb[0].mxu1 }
 0x1d3   :  { %v758_v28 = vpop.f32.mrb[1].mxu1  ;;  %v857_v30 = vpop.f32.mrb[4].mxu0 }
 0x1d4   :  { %v759_v31 = vadd.f32 %v758_v28, %v757_v27  ;;  %v498_v32 = vpop.f32.mrb[5].mxu0 }
 0x1d6   :  { %v499_v34 = vadd.f32 %v759_v31, %v498_v32  ;;  %v760_v35 = vpop.f32.mrb[2].mxu1 }
 0x1d7   :  { %v761_v36 = vpop.f32.mrb[3].mxu1  ;;  %v860_v39 = vpop.f32.mrb[6].mxu0 }
 0x1d8   :  { %v524_v40 = vmul.f32 %v709_v33, %v499_v34  ;;  %v762_v41 = vadd.f32 %v761_v36, %v760_v35  ;;  %v508_v42 = vpop.f32.mrb[7].mxu0 }
 0x1da   :  { %v504_v43 = vadd.f32 %v857_v30, %v762_v41  ;;  %v763_v44 = vpop.f32.mrb[4].mxu1  ;;  %v535_v45 = vadd.f32 %v710_v38, %v524_v40 }
 0x1db   :  { %v764_v46 = vpop.f32.mrb[5].mxu1 }
 0x1dc   :  { %v525_v47 = vmul.f32 %v709_v33, %v504_v43  ;;  %v765_v48 = vadd.f32 %v764_v46, %v763_v44  ;;  %v539_v49 = vmax.f32 %v535_v45, 0.0 }
 0x1de   :  { %v536_v50 = vadd.f32 %v710_v38, %v525_v47  ;;  %v509_v51 = vadd.f32 %v765_v48, %v508_v42  ;;  %v766_v52 = vpop.f32.mrb[6].mxu1  ;;  %893 = vmatprep.mubr.f32.mxu1 %v539_v49 }
 0x1df   :  { %v767_v53 = vpop.f32.mrb[7].mxu1 }
 0x1e0   :  { %v540_v54 = vmax.f32 %v536_v50, 0.0  ;;  %v526_v55 = vmul.f32 %v709_v33, %v509_v51  ;;  %v768_v56 = vadd.f32 %v767_v53, %v766_v52 }
 0x1e2   :  { %v514_v57 = vadd.f32 %v860_v39, %v768_v56  ;;  %894 = vmatmul.mubr.f32.vlgmr.msra.gmra.mrb[8].mxu1 %v540_v54  ;;  %v537_v58 = vadd.f32 %v710_v38, %v526_v55 }
 0x1e4   :  { %v527_v59 = vmul.f32 %v709_v33, %v514_v57  ;;  %v541_v60 = vmax.f32 %v537_v58, 0.0 }
 0x1e6   :  { %896 = vmatprep.mubr.f32.mxu1 %v541_v60  ;;  %v538_v61 = vadd.f32 %v710_v38, %v527_v59 }
 0x1e8   :  { %v542_v62 = vmax.f32 %v538_v61, 0.0 }
 0x1ea   :  { %897 = vmatmul.mubr.f32.gmra.mrb[10].mxu1 %v542_v62 }
 0x2b5   :  { %v895_v0 = vpop.f32.mrb[8].mxu1 }
 0x2b6   :  { %v652_v2 = vmul.f32 %v895_v0, %v711_v63  ;;  %v625_v3 = vpop.f32.mrb[9].mxu1 }
 0x2b7   :  { %v651_v4 = vmul.f32 %v711_v63, %v625_v3 }
 0x2b8   :  { %v663_v6 = vadd.f32 %v712_v1, %v652_v2 }
 0x2b9   :  { %v662_v7 = vadd.f32 %v712_v1, %v651_v4 }
 0x2ba   :  { %v667_v8 = vadd.f32 %v663_v6, %v1151_v26 }
 0x2bb   :  { %v666_v9 = vadd.f32 %v662_v7, %v1144_v5 }
 0x2bc   :  { %v671_v10 = vmax.f32 %v667_v8, 0.0 }
 0x2bd   :  { %v670_v11 = vmax.f32 %v666_v9, 0.0  ;;  %v898_v12 = vpop.f32.mrb[10].mxu1 }
 0x2be   :  { %675 = vst.msk [vmem:[#allocation5 + $0x8] sm:$0xff] %vm58_vm0, %v671_v10  ;;  %v654_v13 = vmul.f32 %v898_v12, %v711_v63  ;;  %v635_v14 = vpop.f32.mrb[11].mxu1 }
 0x2bf   :  { %674 = vst.msk [vmem:[#allocation5] sm:$0xff] %vm58_vm0, %v670_v11  ;;  %v653_v15 = vmul.f32 %v711_v63, %v635_v14 }
 0x2c0   :  { %v665_v16 = vadd.f32 %v712_v1, %v654_v13 }
 0x2c1   :  { %v664_v17 = vadd.f32 %v712_v1, %v653_v15 }
 0x2c2   :  { %v669_v18 = vadd.f32 %v665_v16, %v1165_v37 }
 0x2c3   :  { %v668_v26 = vadd.f32 %v664_v17, %v1156_v29 }
 0x2c4   :  { %v673_v19 = vmax.f32 %v669_v18, 0.0 }
 0x2c5   :  { %v672_v5 = vmax.f32 %v668_v26, 0.0 }
 0x2c6   :  { %677 = vst.msk [vmem:[#allocation5 + $0x18] sm:$0xff] %vm58_vm0, %v673_v19 }
 0x2c7   :  { %676 = vst.msk [vmem:[#allocation5 + $0x10] sm:$0xff] %vm58_vm0, %v672_v5 }
 0x2c8   :  { %1040 = shalt.err (!%p1037_p12)
}
 0x2c9   :  { %s1041_s19 = scalar_lea.hbm %s1276_s10, 512 }
 0x2ca   :  { %p1042_p13 = scmp.ne.s32.totalorder %s1276_s10, %s1041_s19  ;;  %p1045_p0 = scmp.lt.u32.totalorder %s1041_s19, %s1276_s10 }
 0x2cc   :  { %p1047_p1 = pnand %p1045_p0, %p1042_p13 }
 0x2ce   :  { %1050 = shalt.err (!%p1047_p1)
}
 0x2cf   :  { %689 = dma.vmem_to_hbm [thread:$0]  %s684_s9, 512, %s1276_s10, [#allocation4], %s1056_s23, %s1056_s23, %s1057_s24  }
 0x2d0   :  { %1053 = dma.done.wait [#allocation4], 512  }
 0x2d1   :  { %1054 = vsyncadd [#allocation4], 4294966784 }
 0x2d2   :  { %693 = vsyncpa [#allocation3], 1 }
 0x2d3   :  { %694 = vsyncpa [#allocation4], 1 }

</bundles_post_ra>
